<compile_context>
chip_gen: v7x
topology: tpu7x:2x2x1
jax: 0.10.0
libtpu: 0.0.40
codegen_flags: <defaults>
</compile_context>

<pallas_src>
import jax
import jax.numpy as jnp
from jax.experimental import pallas as pl
from jax.experimental.pallas import tpu as pltpu


def se_mul_conv1x1_kernel(gate_ref, x_ref, w_ref, o_ref):
    # Fold sigmoid(gate) into the (small) weight tile instead of scaling the
    # whole activation: touches OC_tile*C elements instead of C*H*W.
    g = jax.nn.sigmoid(gate_ref[0])                      # (1, C) f32
    wg = (w_ref[...] * g).astype(jnp.bfloat16)           # (oc_tile, C) bf16
    xb = x_ref[0].astype(jnp.bfloat16)                   # (C, HW) bf16
    # MXU: (oc_tile, C) @ (C, HW) -> (oc_tile, HW), f32 accumulate.
    o_ref[0] = jnp.dot(wg, xb, preferred_element_type=jnp.float32)


@jax.jit
def sigmoid_mul_conv2d(x215, x211, weight):
    """x215: (N, C, 1, 1) gate, x211: (N, C, H, W), weight: (OC, C, 1, 1).

    Returns (N, OC, H, W) float32, matching
    Conv2d(C, OC, 1, bias=False)(sigmoid(x215) * x211) in PyTorch.
    """
    N, C, H, W = x211.shape
    OC = weight.shape[0]
    HW = H * W

    # Free, contiguous reshapes (no NCHW<->NHWC transpose, no pad/slice).
    x = x211.reshape(N, C, HW)        # (N, C, HW)
    gate = x215.reshape(N, 1, C)      # (N, 1, C)  -- per-batch gate
    w = weight.reshape(OC, C)         # (OC, C)

    # Split OC into 2 pipelined steps when it tiles cleanly (sublane mult of 8).
    half = OC // 2
    oc_tile = half if (OC % 2 == 0 and half % 8 == 0) else OC
    grid = (N, OC // oc_tile)

    out = pl.pallas_call(
        se_mul_conv1x1_kernel,
        out_shape=jax.ShapeDtypeStruct((N, OC, HW), jnp.float32),
        grid_spec=pl.GridSpec(
            grid=grid,
            in_specs=[
                # gate: per-batch, resident across OC steps
                pl.BlockSpec((1, 1, C), lambda b, i: (b, 0, 0)),
                # x: per-batch, resident across OC steps (no re-fetch)
                pl.BlockSpec((1, C, HW), lambda b, i: (b, 0, 0)),
                # w: OC tile, pipelined across the OC axis
                pl.BlockSpec((oc_tile, C), lambda b, i: (i, 0)),
            ],
            out_specs=pl.BlockSpec((1, oc_tile, HW), lambda b, i: (b, i, 0)),
        ),
        compiler_params=pltpu.CompilerParams(
            dimension_semantics=("parallel", "parallel"),
        ),
    )(gate, x, w)

    return out.reshape(N, OC, H, W)


if __name__ == "__main__":
    key = jax.random.PRNGKey(0)
    k1, k2, k3 = jax.random.split(key, 3)

    # Shapes dictated by the module: Conv2d(960 -> 160, 1x1), input 1x960x14x14.
    N, C, H, W, OC = 1, 960, 14, 14, 160
    x211 = jax.random.normal(k1, (N, C, H, W), dtype=jnp.float32)
    x215 = jax.random.normal(k2, (N, C, 1, 1), dtype=jnp.float32)
    weight = jax.random.normal(k3, (OC, C, 1, 1), dtype=jnp.float32) * 0.02

    out = sigmoid_mul_conv2d(x215, x211, weight)
    jax.block_until_ready(out)

    # Reference check in plain JAX (f32).
    ref = jnp.einsum(
        "nchw,oc->nohw",
        jax.nn.sigmoid(x215) * x211,
        weight.reshape(OC, C),
    )
    assert out.shape == (N, OC, H, W), out.shape
    max_err = float(jnp.max(jnp.abs(out - ref)))
    # bf16 MXU operands with f32 accumulation over K=960 -> relaxed tolerance.
    assert jnp.allclose(out, ref, atol=2e-2, rtol=2e-2), max_err
    print("KERNEL_OK")
</pallas_src>

<mosaic_0001>
module attributes {stable_mosaic.version = 11 : i64} {
  func.func @se_mul_conv1x1_kernel(%arg0: i32, %arg1: i32, %arg2: memref<1x1x960xf32, #tpu.memory_space<vmem>>, %arg3: memref<1x960x196xf32, #tpu.memory_space<vmem>>, %arg4: memref<80x960xf32, #tpu.memory_space<vmem>>, %arg5: memref<1x80x196xf32, #tpu.memory_space<vmem>>) attributes {dimension_semantics = [#tpu.dimension_semantics<parallel>, #tpu.dimension_semantics<parallel>], iteration_bounds = array<i64: 1, 2>, scalar_prefetch = 0 : i64, scratch_operands = 0 : i64, tpu.core_type = #tpu.core_type<tc>, window_params = [{transform_indices = @transform_0, window_bounds = array<i64: 1, 1, 960>}, {transform_indices = @transform_1, window_bounds = array<i64: 1, 960, 196>}, {transform_indices = @transform_2, window_bounds = array<i64: 80, 960>}, {transform_indices = @transform_3, window_bounds = array<i64: 1, 80, 196>}]} {
    %c0 = arith.constant 0 : index
    %c0_0 = arith.constant 0 : index
    %c0_1 = arith.constant 0 : index
    %0 = vector.load %arg2[%c0, %c0_0, %c0_1] : memref<1x1x960xf32, #tpu.memory_space<vmem>>, vector<1x1x960xf32>
    %1 = vector.shape_cast %0 : vector<1x1x960xf32> to vector<1x960xf32>
    %2 = arith.negf %1 : vector<1x960xf32>
    %3 = math.exp %2 : vector<1x960xf32>
    %cst = arith.constant 1.000000e+00 : f32
    %4 = vector.broadcast %cst : f32 to vector<1x960xf32>
    %5 = arith.addf %4, %3 : vector<1x960xf32>
    %6 = arith.divf %4, %5 : vector<1x960xf32>
    %c0_2 = arith.constant 0 : index
    %c0_3 = arith.constant 0 : index
    %7 = vector.load %arg4[%c0_2, %c0_3] : memref<80x960xf32, #tpu.memory_space<vmem>>, vector<80x960xf32>
    %8 = vector.broadcast %6 : vector<1x960xf32> to vector<80x960xf32>
    %9 = arith.mulf %7, %8 : vector<80x960xf32>
    %10 = arith.truncf %9 : vector<80x960xf32> to vector<80x960xbf16>
    %c0_4 = arith.constant 0 : index
    %c0_5 = arith.constant 0 : index
    %c0_6 = arith.constant 0 : index
    %11 = vector.load %arg3[%c0_4, %c0_5, %c0_6] : memref<1x960x196xf32, #tpu.memory_space<vmem>>, vector<1x960x196xf32>
    %12 = vector.shape_cast %11 : vector<1x960x196xf32> to vector<960x196xf32>
    %13 = arith.truncf %12 : vector<960x196xf32> to vector<960x196xbf16>
    %cst_7 = arith.constant dense<0.000000e+00> : vector<80x196xf32>
    %14 = tpu.matmul %10, %13, %cst_7 {dimension_numbers = #tpu.dot_dimension_numbers<[1], [0], [0], [1], [0, 0, 1, 1], [], []>} : vector<80x960xbf16>, vector<960x196xbf16>, vector<80x196xf32> -> vector<80x196xf32>
    %c0_8 = arith.constant 0 : index
    %c0_9 = arith.constant 0 : index
    %c0_10 = arith.constant 0 : index
    %15 = vector.load %arg5[%c0_8, %c0_9, %c0_10] : memref<1x80x196xf32, #tpu.memory_space<vmem>>, vector<1x80x196xf32>
    %16 = vector.shape_cast %15 : vector<1x80x196xf32> to vector<80x196xf32>
    %17 = vector.shape_cast %14 : vector<80x196xf32> to vector<1x80x196xf32>
    tpu.vector_store %arg5[%c0_8, %c0_9, %c0_10], %17 {strides = array<i32>} : memref<1x80x196xf32, #tpu.memory_space<vmem>>, vector<1x80x196xf32>,
    return
  }
  func.func @transform_0(%arg0: i32, %arg1: i32) -> (i32, i32, i32) {
    %c0_i32 = arith.constant 0 : i32
    %c0_i32_0 = arith.constant 0 : i32
    %c0_i32_1 = arith.constant 0 : i32
    return %arg0, %c0_i32, %c0_i32_0 : i32, i32, i32
  }
  func.func @transform_1(%arg0: i32, %arg1: i32) -> (i32, i32, i32) {
    %c0_i32 = arith.constant 0 : i32
    %c0_i32_0 = arith.constant 0 : i32
    %c0_i32_1 = arith.constant 0 : i32
    return %arg0, %c0_i32, %c0_i32_0 : i32, i32, i32
  }
  func.func @transform_2(%arg0: i32, %arg1: i32) -> (i32, i32) {
    %c0_i32 = arith.constant 0 : i32
    %c0_i32_0 = arith.constant 0 : i32
    return %arg1, %c0_i32 : i32, i32
  }
  func.func @transform_3(%arg0: i32, %arg1: i32) -> (i32, i32, i32) {
    %c0_i32 = arith.constant 0 : i32
    %c0_i32_0 = arith.constant 0 : i32
    return %arg0, %arg1, %c0_i32 : i32, i32, i32
  }
}

</mosaic_0001>

<bundles_post_ra>
// kernel: sigmoid_mul_conv2d.1
= control target key start
LH: loop header
LB: loop body
LE: loop exit
PB: predicated region body
PF: predicated region fallthrough
CT: control target
= control target key end

     0   :  { %s1486_s12 = smov 0   ;;  %s1488_s13 = smov 0   ;;  %s2632_s0 = inlined_call_operand.vmem [shape: f32[1,1,960], index: 0, kind: input, shape index: {}]   ;;  %s2633_s1 = inlined_call_operand.vmem [shape: f32[1,960,196], index: 1, kind: input, shape index: {}]   ;;  %s2634_s2 = inlined_call_operand.vmem [shape: f32[160,960], index: 2, kind: input, shape index: {}]   ;;  %s2635_s3 = inlined_call_operand.vmem [shape: f32[1,160,196], index: 3, kind: output, shape index: {}]  }
   0x1   :  { %s1490_s14 = smov 0  }
   0x2 LB: > { %s22_s15 = sadd.s32 1, %s1460_s13  ;;  %p1339_p0 = scmp.ge.s32.totalorder %s1464_s14, 1  ;;  %s1464_s14 = sphi %s1490_s14, %s13_s14   ;;  %s1460_s13 = sphi %s1488_s13, %s2638_s13   ;;  %s1456_s12 = sphi %s1486_s12, %s2637_s12  }
   0x3   : > { %p23_p1 = scmp.ge.s32.totalorder %s22_s15, 2  ;;  %p172_p2 = scmp.lt.s32.totalorder %s1464_s14, 3 }
   0x5   : > { %s2640_s15 = smov (%p23_p1, %s22_s15), 0  ;;  %p173_p3 = pnand %p1339_p0, %p172_p2 }
   0x6   : > { %v488_v0 = vld [vmem:[%s2633_s1 + $0x8] sm:$0xff] (!%p173_p3)  ;;  %v490_v1 = vld [vmem:[%s2633_s1 + $0x18] sm:$0xff] (!%p173_p3)  ;;  %v487_v5 = vld [vmem:[%s2633_s1] sm:$0xff] (!%p173_p3)  ;;  %s220_s27 = smul.u32 (!%p173_p3), 10, %s1456_s12  ;;  %vm847_vm0 = vcmask (!%p173_p3), 523264   ;;  %vm1196_vm1 = vcmask (!%p173_p3), 556032  }
   0x7   : > { %176 = sbr.rel (%p173_p3) target bundleno = 387 (0x183), region = 32  ;;  %v616_v2 = vld [vmem:[%s2633_s1 + $0x408] sm:$0xff] (!%p173_p3)  ;;  %v728_v3 = vpack.c.bf16 (!%p173_p3), %v490_v1, %v488_v0  ;;  %v618_v4 = vld [vmem:[%s2633_s1 + $0x418] sm:$0xff] (!%p173_p3)  ;;  %v489_v6 = vld [vmem:[%s2633_s1 + $0x10] sm:$0xff] (!%p173_p3) }
   0x8   : > { %v792_v7 = vpack.c.bf16 (!%p173_p3), %v618_v4, %v616_v2  ;;  %v727_v8 = vpack.c.bf16 (!%p173_p3), %v489_v6, %v487_v5  ;;  %v615_v9 = vld [vmem:[%s2633_s1 + $0x400] sm:$0xff] (!%p173_p3)  ;;  %v617_v10 = vld [vmem:[%s2633_s1 + $0x410] sm:$0xff] (!%p173_p3)  ;;  %v492_v11 = vld [vmem:[%s2633_s1 + $0x28] sm:$0xff] (!%p173_p3)  ;;  %p1860_p4 = scmp.lt.s32.totalorder (!%p173_p3), %s220_s27, 19 }
   0x9   : > { %863 = vmatprep.subr.bf16.mxu1 (!%p173_p3), %v728_v3  ;;  %v791_v12 = vpack.c.bf16 (!%p173_p3), %v617_v10, %v615_v9  ;;  %v494_v13 = vld [vmem:[%s2633_s1 + $0x38] sm:$0xff] (!%p173_p3)  ;;  %v620_v14 = vld [vmem:[%s2633_s1 + $0x428] sm:$0xff] (!%p173_p3)  ;;  %v491_v18 = vld [vmem:[%s2633_s1 + $0x20] sm:$0xff] (!%p173_p3) }
   0xa   : > { %v622_v15 = vld [vmem:[%s2633_s1 + $0x438] sm:$0xff] (!%p173_p3)  ;;  %1029 = vmatprep.subr.bf16.mxu0 (!%p173_p3), %v792_v7  ;;  %864 = vmatpush1.bf16.msra.mxu1 (!%p173_p3), %v727_v8  ;;  %v730_v16 = vpack.c.bf16 (!%p173_p3), %v494_v13, %v492_v11  ;;  %v493_v19 = vld [vmem:[%s2633_s1 + $0x30] sm:$0xff] (!%p173_p3)  ;;  %v619_v20 = vld [vmem:[%s2633_s1 + $0x420] sm:$0xff] (!%p173_p3) }
   0xb   : > { %v794_v17 = vpack.c.bf16 (!%p173_p3), %v622_v15, %v620_v14  ;;  %1030 = vmatpush1.bf16.msra.mxu0 (!%p173_p3), %v791_v12  ;;  %v729_v21 = vpack.c.bf16 (!%p173_p3), %v493_v19, %v491_v18  ;;  %v621_v22 = vld [vmem:[%s2633_s1 + $0x430] sm:$0xff] (!%p173_p3)  ;;  %v496_v23 = vld [vmem:[%s2633_s1 + $0x48] sm:$0xff] (!%p173_p3)  ;;  %v498_v24 = vld [vmem:[%s2633_s1 + $0x58] sm:$0xff] (!%p173_p3) }
   0xc   : > { %865 = vmatprep.subr.bf16.mxu1 (!%p173_p3), %v730_v16  ;;  %v793_v25 = vpack.c.bf16 (!%p173_p3), %v621_v22, %v619_v20  ;;  %v732_v26 = vpack.c.bf16 (!%p173_p3), %v498_v24, %v496_v23  ;;  %v624_v27 = vld [vmem:[%s2633_s1 + $0x448] sm:$0xff] (!%p173_p3)  ;;  %v626_v28 = vld [vmem:[%s2633_s1 + $0x458] sm:$0xff] (!%p173_p3)  ;;  %v495_v29 = vld [vmem:[%s2633_s1 + $0x40] sm:$0xff] (!%p173_p3) }
   0xd   : > { %1031 = vmatprep.subr.bf16.mxu0 (!%p173_p3), %v794_v17  ;;  %v796_v30 = vpack.c.bf16 (!%p173_p3), %v626_v28, %v624_v27  ;;  %v497_v31 = vld [vmem:[%s2633_s1 + $0x50] sm:$0xff] (!%p173_p3)  ;;  %v623_v32 = vld [vmem:[%s2633_s1 + $0x440] sm:$0xff] (!%p173_p3)  ;;  %v500_v35 = vld [vmem:[%s2633_s1 + $0x68] sm:$0xff] (!%p173_p3) }
   0xe   : > { %v625_v33 = vld [vmem:[%s2633_s1 + $0x450] sm:$0xff]  ;;  %866 = vmatpush1.bf16.msra.mxu1 %v729_v21  ;;  %v731_v34 = vpack.c.bf16 %v497_v31, %v495_v29  ;;  %v502_v36 = vld [vmem:[%s2633_s1 + $0x78] sm:$0xff]  ;;  %v628_v37 = vld [vmem:[%s2633_s1 + $0x468] sm:$0xff]  ;;  %s2642_s27 = smov (!%p1860_p4, %s220_s27), 19 }
   0xf   : > { %1032 = vmatpush1.bf16.msra.mxu0 %v793_v25  ;;  %867 = vmatprep.subr.bf16.mxu1 %v732_v26  ;;  %v795_v38 = vpack.c.bf16 %v625_v33, %v623_v32  ;;  %v734_v39 = vpack.c.bf16 %v502_v36, %v500_v35  ;;  %v630_v40 = vld [vmem:[%s2633_s1 + $0x478] sm:$0xff]  ;;  %v499_v41 = vld [vmem:[%s2633_s1 + $0x60] sm:$0xff]  ;;  %v501_v42 = vld [vmem:[%s2633_s1 + $0x70] sm:$0xff]  ;;  %s1352_s5 = sshll.u32 %s2642_s27, 6 }
  0x10   : > { %1033 = vmatprep.subr.bf16.mxu0 %v796_v30  ;;  %v798_v43 = vpack.c.bf16 %v630_v40, %v628_v37  ;;  %v627_v44 = vld [vmem:[%s2633_s1 + $0x460] sm:$0xff]  ;;  %v629_v45 = vld [vmem:[%s2633_s1 + $0x470] sm:$0xff]  ;;  %v504_v46 = vld [vmem:[%s2633_s1 + $0x88] sm:$0xff]  ;;  %v733_v50 = vpack.c.bf16 %v501_v42, %v499_v41  ;;  %s1924_s8 = scalar_lea.vmem %s2634_s2, %s1352_s5 }
  0x11   : > { %v506_v47 = vld [vmem:[%s2633_s1 + $0x98] sm:$0xff]  ;;  %v632_v48 = vld [vmem:[%s2633_s1 + $0x488] sm:$0xff]  ;;  %v797_v51 = vpack.c.bf16 %v629_v45, %v627_v44  ;;  %v503_v53 = vld [vmem:[%s2633_s1 + $0x80] sm:$0xff] }
  0x12   : > { %v634_v49 = vld [vmem:[%s2633_s1 + $0x498] sm:$0xff]  ;;  %868 = vmatpush1.bf16.msra.mxu1 %v731_v34  ;;  %v736_v52 = vpack.c.bf16 %v506_v47, %v504_v46  ;;  %v505_v54 = vld [vmem:[%s2633_s1 + $0x90] sm:$0xff]  ;;  %v631_v55 = vld [vmem:[%s2633_s1 + $0x480] sm:$0xff] }
  0x13   : > { %1034 = vmatpush1.bf16.msra.mxu0 %v795_v38  ;;  %869 = vmatprep.subr.bf16.mxu1 %v734_v39  ;;  %v800_v56 = vpack.c.bf16 %v634_v49, %v632_v48  ;;  %v633_v57 = vld [vmem:[%s2633_s1 + $0x490] sm:$0xff]  ;;  %v508_v58 = vld [vmem:[%s2633_s1 + $0xa8] sm:$0xff]  ;;  %v510_v59 = vld [vmem:[%s2633_s1 + $0xb8] sm:$0xff]  ;;  %v735_v62 = vpack.c.bf16 %v505_v54, %v503_v53 }
  0x14   : > { %1035 = vmatprep.subr.bf16.mxu0 %v798_v43  ;;  %v636_v60 = vld [vmem:[%s2633_s1 + $0x4a8] sm:$0xff]  ;;  %v638_v61 = vld [vmem:[%s2633_s1 + $0x4b8] sm:$0xff]  ;;  %v799_v63 = vpack.c.bf16 %v633_v57, %v631_v55  ;;  %v738_v0 = vpack.c.bf16 %v510_v59, %v508_v58  ;;  %v507_v1 = vld [vmem:[%s2633_s1 + $0xa0] sm:$0xff] }
  0x15   : > { %v509_v2 = vld [vmem:[%s2633_s1 + $0xb0] sm:$0xff]  ;;  %v635_v3 = vld [vmem:[%s2633_s1 + $0x4a0] sm:$0xff]  ;;  %v802_v4 = vpack.c.bf16 %v638_v61, %v636_v60  ;;  %v512_v6 = vld [vmem:[%s2633_s1 + $0xc8] sm:$0xff] }
  0x16   : > { %870 = vmatpush1.bf16.msra.mxu1 %v733_v50  ;;  %v637_v5 = vld [vmem:[%s2633_s1 + $0x4b0] sm:$0xff]  ;;  %v514_v7 = vld [vmem:[%s2633_s1 + $0xd8] sm:$0xff]  ;;  %v640_v8 = vld [vmem:[%s2633_s1 + $0x4c8] sm:$0xff]  ;;  %v737_v10 = vpack.c.bf16 %v509_v2, %v507_v1 }
  0x17   : > { %1036 = vmatpush1.bf16.msra.mxu0 %v797_v51  ;;  %871 = vmatprep.subr.bf16.mxu1 %v736_v52  ;;  %v642_v9 = vld [vmem:[%s2633_s1 + $0x4d8] sm:$0xff]  ;;  %v801_v11 = vpack.c.bf16 %v637_v5, %v635_v3  ;;  %v740_v12 = vpack.c.bf16 %v514_v7, %v512_v6  ;;  %v511_v13 = vld [vmem:[%s2633_s1 + $0xc0] sm:$0xff]  ;;  %v513_v14 = vld [vmem:[%s2633_s1 + $0xd0] sm:$0xff] }
  0x18   : > { %1037 = vmatprep.subr.bf16.mxu0 %v800_v56  ;;  %v639_v15 = vld [vmem:[%s2633_s1 + $0x4c0] sm:$0xff]  ;;  %v804_v16 = vpack.c.bf16 %v642_v9, %v640_v8  ;;  %v641_v17 = vld [vmem:[%s2633_s1 + $0x4d0] sm:$0xff]  ;;  %v516_v18 = vld [vmem:[%s2633_s1 + $0xe8] sm:$0xff]  ;;  %v739_v22 = vpack.c.bf16 %v513_v14, %v511_v13 }
  0x19   : > { %v518_v19 = vld [vmem:[%s2633_s1 + $0xf8] sm:$0xff]  ;;  %v644_v20 = vld [vmem:[%s2633_s1 + $0x4e8] sm:$0xff]  ;;  %v803_v23 = vpack.c.bf16 %v641_v17, %v639_v15  ;;  %v515_v25 = vld [vmem:[%s2633_s1 + $0xe0] sm:$0xff] }
  0x1a   : > { %872 = vmatpush1.bf16.msra.mxu1 %v735_v62  ;;  %v646_v21 = vld [vmem:[%s2633_s1 + $0x4f8] sm:$0xff]  ;;  %v742_v24 = vpack.c.bf16 %v518_v19, %v516_v18  ;;  %v517_v26 = vld [vmem:[%s2633_s1 + $0xf0] sm:$0xff]  ;;  %v643_v27 = vld [vmem:[%s2633_s1 + $0x4e0] sm:$0xff] }
  0x1b   : > { %1038 = vmatpush1.bf16.msra.mxu0 %v799_v63  ;;  %873 = vmatprep.subr.bf16.mxu1 %v738_v0  ;;  %v806_v28 = vpack.c.bf16 %v646_v21, %v644_v20  ;;  %v645_v29 = vld [vmem:[%s2633_s1 + $0x4f0] sm:$0xff]  ;;  %v520_v30 = vld [vmem:[%s2633_s1 + $0x108] sm:$0xff]  ;;  %v522_v31 = vld [vmem:[%s2633_s1 + $0x118] sm:$0xff]  ;;  %v741_v34 = vpack.c.bf16 %v517_v26, %v515_v25 }
  0x1c   : > { %1039 = vmatprep.subr.bf16.mxu0 %v802_v4  ;;  %v648_v32 = vld [vmem:[%s2633_s1 + $0x508] sm:$0xff]  ;;  %v650_v33 = vld [vmem:[%s2633_s1 + $0x518] sm:$0xff]  ;;  %v805_v35 = vpack.c.bf16 %v645_v29, %v643_v27  ;;  %v744_v36 = vpack.c.bf16 %v522_v31, %v520_v30  ;;  %v519_v37 = vld [vmem:[%s2633_s1 + $0x100] sm:$0xff] }
  0x1d   : > { %v521_v38 = vld [vmem:[%s2633_s1 + $0x110] sm:$0xff]  ;;  %v647_v39 = vld [vmem:[%s2633_s1 + $0x500] sm:$0xff]  ;;  %v808_v40 = vpack.c.bf16 %v650_v33, %v648_v32  ;;  %v524_v42 = vld [vmem:[%s2633_s1 + $0x128] sm:$0xff] }
  0x1e   : > { %874 = vmatpush1.bf16.msra.mxu1 %v737_v10  ;;  %v649_v41 = vld [vmem:[%s2633_s1 + $0x510] sm:$0xff]  ;;  %v526_v43 = vld [vmem:[%s2633_s1 + $0x138] sm:$0xff]  ;;  %v652_v44 = vld [vmem:[%s2633_s1 + $0x528] sm:$0xff]  ;;  %v743_v46 = vpack.c.bf16 %v521_v38, %v519_v37 }
  0x1f   : > { %1040 = vmatpush1.bf16.msra.mxu0 %v801_v11  ;;  %875 = vmatprep.subr.bf16.mxu1 %v740_v12  ;;  %v654_v45 = vld [vmem:[%s2633_s1 + $0x538] sm:$0xff]  ;;  %v807_v47 = vpack.c.bf16 %v649_v41, %v647_v39  ;;  %v746_v48 = vpack.c.bf16 %v526_v43, %v524_v42  ;;  %v523_v49 = vld [vmem:[%s2633_s1 + $0x120] sm:$0xff]  ;;  %v525_v50 = vld [vmem:[%s2633_s1 + $0x130] sm:$0xff] }
  0x20   : > { %1041 = vmatprep.subr.bf16.mxu0 %v804_v16  ;;  %v651_v51 = vld [vmem:[%s2633_s1 + $0x520] sm:$0xff]  ;;  %v810_v52 = vpack.c.bf16 %v654_v45, %v652_v44  ;;  %v653_v53 = vld [vmem:[%s2633_s1 + $0x530] sm:$0xff]  ;;  %v528_v54 = vld [vmem:[%s2633_s1 + $0x148] sm:$0xff]  ;;  %v745_v58 = vpack.c.bf16 %v525_v50, %v523_v49 }
  0x21   : > { %v530_v55 = vld [vmem:[%s2633_s1 + $0x158] sm:$0xff]  ;;  %v656_v56 = vld [vmem:[%s2633_s1 + $0x548] sm:$0xff]  ;;  %v809_v59 = vpack.c.bf16 %v653_v53, %v651_v51  ;;  %v527_v61 = vld [vmem:[%s2633_s1 + $0x140] sm:$0xff] }
  0x22   : > { %876 = vmatpush1.bf16.msra.mxu1 %v739_v22  ;;  %v658_v57 = vld [vmem:[%s2633_s1 + $0x558] sm:$0xff]  ;;  %v748_v60 = vpack.c.bf16 %v530_v55, %v528_v54  ;;  %v529_v62 = vld [vmem:[%s2633_s1 + $0x150] sm:$0xff]  ;;  %v655_v63 = vld [vmem:[%s2633_s1 + $0x540] sm:$0xff] }
  0x23   : > { %1042 = vmatpush1.bf16.msra.mxu0 %v803_v23  ;;  %877 = vmatprep.subr.bf16.mxu1 %v742_v24  ;;  %v812_v0 = vpack.c.bf16 %v658_v57, %v656_v56  ;;  %v657_v1 = vld [vmem:[%s2633_s1 + $0x550] sm:$0xff]  ;;  %v532_v2 = vld [vmem:[%s2633_s1 + $0x168] sm:$0xff]  ;;  %v534_v3 = vld [vmem:[%s2633_s1 + $0x178] sm:$0xff]  ;;  %v747_v6 = vpack.c.bf16 %v529_v62, %v527_v61 }
  0x24   : > { %1043 = vmatprep.subr.bf16.mxu0 %v806_v28  ;;  %v660_v4 = vld [vmem:[%s2633_s1 + $0x568] sm:$0xff]  ;;  %v662_v5 = vld [vmem:[%s2633_s1 + $0x578] sm:$0xff]  ;;  %v531_v7 = vld [vmem:[%s2633_s1 + $0x160] sm:$0xff]  ;;  %v811_v8 = vpack.c.bf16 %v657_v1, %v655_v63  ;;  %v750_v9 = vpack.c.bf16 %v534_v3, %v532_v2 }
  0x25   : > { %v533_v10 = vld [vmem:[%s2633_s1 + $0x170] sm:$0xff]  ;;  %v659_v11 = vld [vmem:[%s2633_s1 + $0x560] sm:$0xff]  ;;  %v814_v13 = vpack.c.bf16 %v662_v5, %v660_v4  ;;  %v536_v14 = vld [vmem:[%s2633_s1 + $0x188] sm:$0xff] }
  0x26   : > { %878 = vmatpush1.bf16.msra.mxu1 %v741_v34  ;;  %v661_v12 = vld [vmem:[%s2633_s1 + $0x570] sm:$0xff]  ;;  %v538_v15 = vld [vmem:[%s2633_s1 + $0x198] sm:$0xff]  ;;  %v239_v16 = vld [vmem:[%s2632_s0] sm:$0xff]  ;;  %v749_v20 = vpack.c.bf16 %v533_v10, %v531_v7 }
  0x27   : > { %1044 = vmatpush1.bf16.msra.mxu0 %v805_v35  ;;  %879 = vmatprep.subr.bf16.mxu1 %v744_v36  ;;  %v664_v17 = vld [vmem:[%s2633_s1 + $0x588] sm:$0xff]  ;;  %v666_v18 = vld [vmem:[%s2633_s1 + $0x598] sm:$0xff]  ;;  %v1344_v19 = vmul.f32 -1.442695, %v239_v16  ;;  %v813_v21 = vpack.c.bf16 %v661_v12, %v659_v11  ;;  %v752_v22 = vpack.c.bf16 %v538_v15, %v536_v14  ;;  %v535_v23 = vld [vmem:[%s2633_s1 + $0x180] sm:$0xff] }
  0x28   : > { %1045 = vmatprep.subr.bf16.mxu0 %v808_v40  ;;  %v537_v24 = vld [vmem:[%s2633_s1 + $0x190] sm:$0xff]  ;;  %v663_v25 = vld [vmem:[%s2633_s1 + $0x580] sm:$0xff]  ;;  %v816_v26 = vpack.c.bf16 %v666_v18, %v664_v17  ;;  %v540_v28 = vld [vmem:[%s2633_s1 + $0x1a8] sm:$0xff] }
  0x29   : > { %1438 = vpow2.f32 %v1344_v19  ;;  %v665_v27 = vld [vmem:[%s2633_s1 + $0x590] sm:$0xff]  ;;  %v542_v29 = vld [vmem:[%s2633_s1 + $0x1b8] sm:$0xff]  ;;  %v668_v30 = vld [vmem:[%s2633_s1 + $0x5a8] sm:$0xff]  ;;  %v751_v32 = vpack.c.bf16 %v537_v24, %v535_v23 }
  0x2a   : > { %880 = vmatpush1.bf16.msra.mxu1 %v743_v46  ;;  %v670_v31 = vld [vmem:[%s2633_s1 + $0x5b8] sm:$0xff]  ;;  %v815_v33 = vpack.c.bf16 %v665_v27, %v663_v25  ;;  %v754_v34 = vpack.c.bf16 %v542_v29, %v540_v28  ;;  %v539_v35 = vld [vmem:[%s2633_s1 + $0x1a0] sm:$0xff]  ;;  %v541_v36 = vld [vmem:[%s2633_s1 + $0x1b0] sm:$0xff] }
  0x2b   : > { %1046 = vmatpush1.bf16.msra.mxu0 %v807_v47  ;;  %881 = vmatprep.subr.bf16.mxu1 %v746_v48  ;;  %v667_v37 = vld [vmem:[%s2633_s1 + $0x5a0] sm:$0xff]  ;;  %v818_v38 = vpack.c.bf16 %v670_v31, %v668_v30  ;;  %v669_v39 = vld [vmem:[%s2633_s1 + $0x5b0] sm:$0xff]  ;;  %v544_v40 = vld [vmem:[%s2633_s1 + $0x1c8] sm:$0xff]  ;;  %v753_v44 = vpack.c.bf16 %v541_v36, %v539_v35 }
  0x2c   : > { %1047 = vmatprep.subr.bf16.mxu0 %v810_v52  ;;  %v546_v41 = vld [vmem:[%s2633_s1 + $0x1d8] sm:$0xff]  ;;  %v672_v42 = vld [vmem:[%s2633_s1 + $0x5c8] sm:$0xff]  ;;  %v817_v45 = vpack.c.bf16 %v669_v39, %v667_v37  ;;  %v543_v47 = vld [vmem:[%s2633_s1 + $0x1c0] sm:$0xff] }
  0x2d   : > { %v674_v43 = vld [vmem:[%s2633_s1 + $0x5d8] sm:$0xff]  ;;  %v756_v46 = vpack.c.bf16 %v546_v41, %v544_v40  ;;  %v545_v48 = vld [vmem:[%s2633_s1 + $0x1d0] sm:$0xff]  ;;  %v671_v49 = vld [vmem:[%s2633_s1 + $0x5c0] sm:$0xff] }
  0x2e   : > { %882 = vmatpush1.bf16.msra.mxu1 %v745_v58  ;;  %v820_v50 = vpack.c.bf16 %v674_v43, %v672_v42  ;;  %v673_v51 = vld [vmem:[%s2633_s1 + $0x5d0] sm:$0xff]  ;;  %v548_v52 = vld [vmem:[%s2633_s1 + $0x1e8] sm:$0xff]  ;;  %v550_v53 = vld [vmem:[%s2633_s1 + $0x1f8] sm:$0xff]  ;;  %v755_v57 = vpack.c.bf16 %v545_v48, %v543_v47 }
  0x2f   : > { %1048 = vmatpush1.bf16.msra.mxu0 %v809_v59  ;;  %883 = vmatprep.subr.bf16.mxu1 %v748_v60  ;;  %v676_v55 = vld [vmem:[%s2633_s1 + $0x5e8] sm:$0xff]  ;;  %v678_v56 = vld [vmem:[%s2633_s1 + $0x5f8] sm:$0xff]  ;;  %v819_v59 = vpack.c.bf16 %v673_v51, %v671_v49  ;;  %v758_v60 = vpack.c.bf16 %v550_v53, %v548_v52  ;;  %v547_v61 = vld [vmem:[%s2633_s1 + $0x1e0] sm:$0xff] }
  0x30   : > { %1049 = vmatprep.subr.bf16.mxu0 %v812_v0  ;;  %v549_v62 = vld [vmem:[%s2633_s1 + $0x1f0] sm:$0xff]  ;;  %v675_v63 = vld [vmem:[%s2633_s1 + $0x5e0] sm:$0xff]  ;;  %v327_v0 = vlaneseq  ;;  %v822_v1 = vpack.c.bf16 %v678_v56, %v676_v55  ;;  %v552_v3 = vld [vmem:[%s2633_s1 + $0x208] sm:$0xff] }
  0x31   : > { %v677_v2 = vld [vmem:[%s2633_s1 + $0x5f0] sm:$0xff]  ;;  %v554_v4 = vld [vmem:[%s2633_s1 + $0x218] sm:$0xff]  ;;  %v680_v5 = vld [vmem:[%s2633_s1 + $0x608] sm:$0xff]  ;;  %v757_v7 = vpack.c.bf16 %v549_v62, %v547_v61 }
  0x32   : > { %884 = vmatpush1.bf16.msra.mxu1 %v747_v6  ;;  %v682_v6 = vld [vmem:[%s2633_s1 + $0x618] sm:$0xff]  ;;  %v760_v10 = vpack.c.bf16 %v554_v4, %v552_v3  ;;  %v247_v16 = vld [vmem:[%s1924_s8 + $0x8] sm:$0xff]  ;;  %v1936_v19 = vld [vmem:[%s2633_s1 + $0x200] sm:$0xff] }
  0x33   : > { %1050 = vmatpush1.bf16.msra.mxu0 %v811_v8  ;;  %885 = vmatprep.subr.bf16.mxu1 %v750_v9  ;;  %v1439_v54 = vpop.eup %1438  ;;  %v821_v8 = vpack.c.bf16 %v677_v2, %v675_v63  ;;  %v1919_v9 = vshrl.u32 %v327_v0, 7  ;;  %v824_v11 = vpack.c.bf16 %v682_v6, %v680_v5  ;;  %v255_v17 = vld [vmem:[%s1924_s8 + $0x48] sm:$0xff]  ;;  %v246_v25 = vld [vmem:[%s1924_s8] sm:$0xff]  ;;  %v558_v36 = vld [vmem:[%s2633_s1 + $0x238] sm:$0xff] }
  0x34   : > { %1051 = vmatprep.subr.bf16.mxu0 %v814_v13  ;;  %v243_v58 = vadd.f32 1.0, %v1439_v54  ;;  %v251_v18 = vld [vmem:[%s1924_s8 + $0x28] sm:$0xff]  ;;  %v250_v30 = vld [vmem:[%s1924_s8 + $0x20] sm:$0xff]  ;;  %v685_v52 = vld [vmem:[%s2633_s1 + $0x630] sm:$0xff] }
  0x35   : > { %v333_v12 = vsub.s32 1, %v1919_v9  ;;  %v349_v13 = vsub.s32 5, %v1919_v9  ;;  %v329_v14 = vsub.s32 0, %v1919_v9  ;;  %v345_v15 = vsub.s32 4, %v1919_v9  ;;  %v259_v24 = vld [vmem:[%s1924_s8 + $0x68] sm:$0xff]  ;;  %v258_v31 = vld [vmem:[%s1924_s8 + $0x60] sm:$0xff] }
  0x36   : > { %886 = vmatpush1.bf16.msra.mxu1 %v749_v20  ;;  %1440 = vrcp.f32 %v243_v58  ;;  %v553_v20 = vld [vmem:[%s2633_s1 + $0x210] sm:$0xff]  ;;  %v267_v37 = vld [vmem:[%s1924_s8 + $0xa8] sm:$0xff]  ;;  %v683_v51 = vld [vmem:[%s2633_s1 + $0x620] sm:$0xff] }
  0x37   : > { %1052 = vmatpush1.bf16.msra.mxu0 %v813_v21  ;;  %887 = vmatprep.subr.bf16.mxu1 %v752_v22  ;;  %v679_v21 = vld [vmem:[%s2633_s1 + $0x600] sm:$0xff]  ;;  %v681_v22 = vld [vmem:[%s2633_s1 + $0x610] sm:$0xff]  ;;  %v684_v43 = vld [vmem:[%s2633_s1 + $0x628] sm:$0xff] }
  0x38   : > { %1053 = vmatprep.subr.bf16.mxu0 %v816_v26  ;;  %v254_v26 = vld [vmem:[%s1924_s8 + $0x40] sm:$0xff]  ;;  %v823_v35 = vpack.c.bf16 %v681_v22, %v679_v21  ;;  %v2006_v55 = vld [vmem:[%s2633_s1 + $0x248] sm:$0xff]  ;;  %v562_v0 = vld [vmem:[%s2633_s1 + $0x258] sm:$0xff] }
  0x39   : > { %v266_v58 = vld [vmem:[%s1924_s8 + $0xa0] sm:$0xff]  ;;  %v271_v2 = vld [vmem:[%s1924_s8 + $0xc8] sm:$0xff]  ;;  %v690_v4 = vld [vmem:[%s2633_s1 + $0x658] sm:$0xff]  ;;  %v764_v21 = vpack.c.bf16 %v562_v0, %v2006_v55 }
  0x3a   : > { %888 = vmatpush1.bf16.msra.mxu1 %v751_v32  ;;  %v688_v3 = vld [vmem:[%s2633_s1 + $0x648] sm:$0xff]  ;;  %v570_v55 = vld [vmem:[%s2633_s1 + $0x298] sm:$0xff] }
  0x3b   : > { %1054 = vmatpush1.bf16.msra.mxu0 %v815_v33  ;;  %889 = vmatprep.subr.bf16.mxu1 %v754_v34  ;;  %v556_v33 = vld [vmem:[%s2633_s1 + $0x228] sm:$0xff]  ;;  %v759_v34 = vpack.c.bf16 %v553_v20, %v1936_v19  ;;  %v828_v22 = vpack.c.bf16 %v690_v4, %v688_v3  ;;  %v569_v4 = vld [vmem:[%s2633_s1 + $0x290] sm:$0xff] }
  0x3c   : > { %1055 = vmatprep.subr.bf16.mxu0 %v818_v38  ;;  %v275_v38 = vld [vmem:[%s1924_s8 + $0xe8] sm:$0xff]  ;;  %v762_v62 = vpack.c.bf16 %v558_v36, %v556_v33  ;;  %v2063_v33 = vld [vmem:[%s2633_s1 + $0x260] sm:$0xff] }
  0x3d   : > { %v283_v6 = vld [vmem:[%s1924_s8 + $0x128] sm:$0xff] }
  0x3e   : > { %890 = vmatpush1.bf16.msra.mxu1 %v753_v44  ;;  %v686_v44 = vld [vmem:[%s2633_s1 + $0x638] sm:$0xff]  ;;  %v299_v0 = vld [vmem:[%s1924_s8 + $0x1a8] sm:$0xff] }
  0x3f   : > { %1056 = vmatpush1.bf16.msra.mxu0 %v817_v45  ;;  %891 = vmatprep.subr.bf16.mxu1 %v756_v46  ;;  %v1988_v45 = vld [vmem:[%s2633_s1 + $0x220] sm:$0xff]  ;;  %v826_v63 = vpack.c.bf16 %v686_v44, %v684_v43 }
  0x40   : > { %1057 = vmatprep.subr.bf16.mxu0 %v820_v50  ;;  %v1947_v23 = vpop.eup %1440  ;;  %v557_v50 = vld [vmem:[%s2633_s1 + $0x230] sm:$0xff] }
  0x41   : > { %v1953_v27 = vrot.slane %v1947_v23, %v333_v12  ;;  %v1956_v28 = vrot.slane %v1947_v23, %v349_v13  ;;  %v1959_v29 = vrot.slane %v1947_v23, %v329_v14  ;;  %v1964_v32 = vrot.slane %v1947_v23, %v345_v15  ;;  %v291_v12 = vld [vmem:[%s1924_s8 + $0x168] sm:$0xff]  ;;  %v262_v13 = vld [vmem:[%s1924_s8 + $0x80] sm:$0xff] }
  0x42   : > { %892 = vmatpush1.bf16.msra.mxu1 %v755_v57  ;;  %v270_v14 = vld [vmem:[%s1924_s8 + $0xc0] sm:$0xff]  ;;  %v825_v15 = vpack.c.bf16 %v685_v52, %v683_v51  ;;  %v693_v51 = vld [vmem:[%s2633_s1 + $0x670] sm:$0xff]  ;;  %v568_v52 = vld [vmem:[%s2633_s1 + $0x288] sm:$0xff] }
  0x43   : > { %1058 = vmatpush1.bf16.msra.mxu0 %v819_v59  ;;  %893 = vmatprep.subr.bf16.mxu1 %v758_v60  ;;  %v368_v39 = vmul.f32 %v1953_v27, %v247_v16  ;;  %v376_v40 = vmul.f32 %v1953_v27, %v255_v17  ;;  %v372_v41 = vmul.f32 %v1956_v28, %v251_v18  ;;  %v274_v59 = vld [vmem:[%s1924_s8 + $0xe0] sm:$0xff]  ;;  %v561_v16 = vld [vmem:[%s2633_s1 + $0x250] sm:$0xff] }
  0x44   : > { %1059 = vmatprep.subr.bf16.mxu0 %v822_v1  ;;  %v380_v42 = vmul.f32 %v1956_v28, %v259_v24  ;;  %v367_v46 = vmul.f32 %v1959_v29, %v246_v25  ;;  %v375_v47 = vmul.f32 %v1959_v29, %v254_v26  ;;  %v371_v48 = vmul.f32 %v1964_v32, %v250_v30  ;;  %v263_v1 = vld [vmem:[%s1924_s8 + $0x88] sm:$0xff]  ;;  %v687_v17 = vld [vmem:[%s2633_s1 + $0x640] sm:$0xff]  ;;  %v689_v18 = vld [vmem:[%s2633_s1 + $0x650] sm:$0xff] }
  0x45   : > { %v379_v49 = vmul.f32 %v1964_v32, %v258_v31  ;;  %v448_v53 = vpack.c.bf16 %v376_v40, %v368_v39  ;;  %v388_v56 = vmul.f32 %v1956_v28, %v267_v37  ;;  %v396_v57 = vmul.f32 %v1956_v28, %v275_v38  ;;  %v564_v24 = vld [vmem:[%s2633_s1 + $0x268] sm:$0xff]  ;;  %v566_v25 = vld [vmem:[%s2633_s1 + $0x278] sm:$0xff]  ;;  %v2076_v39 = vld [vmem:[%s2633_s1 + $0x660] sm:$0xff] }
  0x46   : > { %894 = vmatpush1.bf16.msra.mxu1 %v757_v7  ;;  %v452_v54 = vpack.c.bf16 %v380_v42, %v372_v41  ;;  %v447_v60 = vpack.c.bf16 %v375_v47, %v367_v46  ;;  %v761_v7 = vpack.c.bf16 %v557_v50, %v1988_v45  ;;  %v384_v19 = vmul.f32 %v1953_v27, %v263_v1  ;;  %v692_v26 = vld [vmem:[%s2633_s1 + $0x668] sm:$0xff]  ;;  %v694_v31 = vld [vmem:[%s2633_s1 + $0x678] sm:$0xff]  ;;  %v282_v45 = vld [vmem:[%s1924_s8 + $0x120] sm:$0xff] }
  0x47   : > { %1060 = vmatpush1.bf16.msra.mxu0 %v821_v8  ;;  %946 = vmatprep.subr.bf16.mxu1 %v760_v10  ;;  %v451_v61 = vpack.c.bf16 %v379_v49, %v371_v48  ;;  %v460_v5 = vpack.c.bf16 %v396_v57, %v388_v56  ;;  %v2028_v8 = vld [vmem:[%s2633_s1 + $0x240] sm:$0xff]  ;;  %v387_v10 = vmul.f32 %v1964_v32, %v266_v58  ;;  %v279_v41 = vld [vmem:[%s1924_s8 + $0x108] sm:$0xff]  ;;  %v698_v57 = vld [vmem:[%s2633_s1 + $0x698] sm:$0xff] }
  0x48   : > { %1112 = vmatprep.subr.bf16.mxu0 %v824_v11  ;;  %895 = vmatprep.mubr.bf16.mxu1 %v448_v53  ;;  %v395_v11 = vmul.f32 %v1964_v32, %v274_v59  ;;  %v392_v20 = vmul.f32 %v1953_v27, %v271_v2  ;;  %v404_v30 = vmul.f32 %v1956_v28, %v283_v6  ;;  %v287_v42 = vld [vmem:[%s1924_s8 + $0x148] sm:$0xff]  ;;  %v290_v46 = vld [vmem:[%s1924_s8 + $0x160] sm:$0xff]  ;;  %v697_v6 = vld [vmem:[%s2633_s1 + $0x690] sm:$0xff] }
  0x49   : > { %1061 = vmatprep.mubr.bf16.mxu0 %v452_v54  ;;  %896 = vmatmul.mubr.bf16.vlgmr.msra.gmra.mrb[0].mxu1 %v447_v60  ;;  %v383_v37 = vmul.f32 %v1959_v29, %v262_v13  ;;  %v391_v38 = vmul.f32 %v1959_v29, %v270_v14  ;;  %v763_v43 = vpack.c.bf16 %v561_v16, %v2028_v8  ;;  %v278_v48 = vld [vmem:[%s1924_s8 + $0x100] sm:$0xff]  ;;  %v696_v56 = vld [vmem:[%s2633_s1 + $0x688] sm:$0xff]  ;;  %v574_v13 = vld [vmem:[%s2633_s1 + $0x2b8] sm:$0xff] }
  0x4a   : > { %1062 = vmatmul.mubr.bf16.vlgmr.msra.gmra.mrb[0].mxu0 %v451_v61  ;;  %947 = vmatpush1.bf16.msra.mxu1 %v759_v34  ;;  %v2068_v34 = vld [vmem:[%s2633_s1 + $0x270] sm:$0xff]  ;;  %v456_v36 = vpack.c.bf16 %v392_v20, %v384_v19  ;;  %v459_v40 = vpack.c.bf16 %v395_v11, %v387_v10  ;;  %v827_v44 = vpack.c.bf16 %v689_v18, %v687_v17  ;;  %v286_v53 = vld [vmem:[%s1924_s8 + $0x140] sm:$0xff]  ;;  %v307_v1 = vld [vmem:[%s1924_s8 + $0x1e8] sm:$0xff] }
  0x4b   : > { %1113 = vmatpush1.bf16.msra.mxu0 %v823_v35  ;;  %948 = vmatprep.subr.bf16.mxu1 %v762_v62  ;;  %v412_v35 = vmul.f32 %v1956_v28, %v291_v12  ;;  %v455_v47 = vpack.c.bf16 %v391_v38, %v383_v37  ;;  %v766_v49 = vpack.c.bf16 %v566_v25, %v564_v24  ;;  %v2107_v61 = vld [vmem:[%s2633_s1 + $0x280] sm:$0xff]  ;;  %v572_v12 = vld [vmem:[%s2633_s1 + $0x2a8] sm:$0xff]  ;;  %v702_v16 = vld [vmem:[%s2633_s1 + $0x6b8] sm:$0xff] }
  0x4c   : > { %1114 = vmatprep.subr.bf16.mxu0 %v826_v63  ;;  %1071 = vmatprep.mubr.bf16.mxu0 %v460_v5  ;;  %v830_v50 = vpack.c.bf16 %v694_v31, %v692_v26  ;;  %v765_v54 = vpack.c.bf16 %v2068_v34, %v2063_v33  ;;  %v400_v59 = vmul.f32 %v1953_v27, %v279_v41  ;;  %v695_v5 = vld [vmem:[%s2633_s1 + $0x680] sm:$0xff]  ;;  %v295_v14 = vld [vmem:[%s1924_s8 + $0x188] sm:$0xff]  ;;  %v2159_v24 = vld [vmem:[%s2633_s1 + $0x6b0] sm:$0xff] }
  0x4d   : > { %v468_v58 = vpack.c.bf16 %v412_v35, %v404_v30  ;;  %905 = vmatprep.mubr.bf16.mxu1 %v456_v36  ;;  %v408_v60 = vmul.f32 %v1953_v27, %v287_v42  ;;  %v403_v62 = vmul.f32 %v1964_v32, %v282_v45  ;;  %v411_v63 = vmul.f32 %v1964_v32, %v290_v46  ;;  %v303_v19 = vld [vmem:[%s1924_s8 + $0x1c8] sm:$0xff]  ;;  %v2144_v20 = vld [vmem:[%s2633_s1 + $0x2a0] sm:$0xff]  ;;  %v578_v41 = vld [vmem:[%s2633_s1 + $0x2d8] sm:$0xff] }
  0x4e   : > { %949 = vmatpush1.bf16.msra.mxu1 %v761_v7  ;;  %v399_v2 = vmul.f32 %v1959_v29, %v278_v48  ;;  %v829_v3 = vpack.c.bf16 %v693_v51, %v2076_v39  ;;  %v407_v8 = vmul.f32 %v1959_v29, %v286_v53  ;;  %v768_v10 = vpack.c.bf16 %v570_v55, %v568_v52  ;;  %v298_v26 = vld [vmem:[%s1924_s8 + $0x1a0] sm:$0xff]  ;;  %v2167_v35 = vld [vmem:[%s2633_s1 + $0x2c8] sm:$0xff]  ;;  %v2198_v51 = vld [vmem:[%s2633_s1 + $0x2d0] sm:$0xff] }
  0x4f   : > { %1115 = vmatpush1.bf16.msra.mxu0 %v825_v15  ;;  %950 = vmatprep.subr.bf16.mxu1 %v764_v21  ;;  %v464_v7 = vpack.c.bf16 %v408_v60, %v400_v59  ;;  %v832_v11 = vpack.c.bf16 %v698_v57, %v696_v56  ;;  %v700_v15 = vld [vmem:[%s2633_s1 + $0x6a8] sm:$0xff]  ;;  %v420_v17 = vmul.f32 %v1956_v28, %v299_v0  ;;  %v2149_v21 = vld [vmem:[%s2633_s1 + $0x2b0] sm:$0xff]  ;;  %v306_v30 = vld [vmem:[%s1924_s8 + $0x1e0] sm:$0xff] }
  0x50   : > { %1116 = vmatprep.subr.bf16.mxu0 %v828_v22  ;;  %v428_v18 = vmul.f32 %v1956_v28, %v307_v1  ;;  %v2154_v22 = vld [vmem:[%s2633_s1 + $0x6a0] sm:$0xff]  ;;  %v467_v25 = vpack.c.bf16 %v411_v63, %v403_v62  ;;  %v463_v31 = vpack.c.bf16 %v407_v8, %v399_v2  ;;  %v767_v33 = vpack.c.bf16 %v569_v4, %v2107_v61  ;;  %v704_v42 = vld [vmem:[%s2633_s1 + $0x6c8] sm:$0xff]  ;;  %v705_v61 = vld [vmem:[%s2633_s1 + $0x6d0] sm:$0xff] }
  0x51   : > { %906 = vmatmul.mubr.bf16.gmra.mrb[4].mxu1 %v455_v47  ;;  %v831_v34 = vpack.c.bf16 %v697_v6, %v695_v5  ;;  %v416_v36 = vmul.f32 %v1953_v27, %v295_v14  ;;  %v294_v37 = vld [vmem:[%s1924_s8 + $0x180] sm:$0xff]  ;;  %v770_v39 = vpack.c.bf16 %v574_v13, %v572_v12  ;;  %v2188_v47 = vmul.f32 %v1964_v32, %v298_v26  ;;  %v311_v55 = vld [vmem:[%s1924_s8 + $0x208] sm:$0xff]  ;;  %v582_v0 = vld [vmem:[%s2633_s1 + $0x2f8] sm:$0xff] }
  0x52   : > { %1072 = vmatmul.mubr.bf16.gmra.mrb[4].mxu0 %v459_v40  ;;  %951 = vmatpush1.bf16.msra.mxu1 %v763_v43  ;;  %v302_v38 = vld [vmem:[%s1924_s8 + $0x1c0] sm:$0xff]  ;;  %v834_v40 = vpack.c.bf16 %v702_v16, %v700_v15  ;;  %v706_v43 = vld [vmem:[%s2633_s1 + $0x6d8] sm:$0xff]  ;;  %v476_v46 = vpack.c.bf16 %v428_v18, %v420_v17  ;;  %v2191_v48 = vmul.f32 %v1964_v32, %v306_v30  ;;  %v319_v56 = vld [vmem:[%s1924_s8 + $0x248] sm:$0xff]  ;;  %v357_v5 = vsub.s32 7, %v1919_v9 }
  0x53   : > { %1117 = vmatpush1.bf16.msra.mxu0 %v827_v44  ;;  %952 = vmatprep.subr.bf16.mxu1 %v766_v49  ;;  %v424_v44 = vmul.f32 %v1953_v27, %v303_v19  ;;  %v2185_v45 = vld [vmem:[%s2633_s1 + $0x2c0] sm:$0xff]  ;;  %v315_v49 = vld [vmem:[%s1924_s8 + $0x228] sm:$0xff]  ;;  %v415_v53 = vmul.f32 %v1959_v29, %v294_v37  ;;  %v769_v57 = vpack.c.bf16 %v2149_v21, %v2144_v20  ;;  %v710_v2 = vld [vmem:[%s2633_s1 + $0x6f8] sm:$0xff]  ;;  %v337_v17 = vsub.s32 2, %v1919_v9 }
  0x54   : > { %1118 = vmatprep.subr.bf16.mxu0 %v830_v50  ;;  %1081 = vmatprep.mubr.bf16.mxu0 %v468_v58  ;;  %v323_v50 = vld [vmem:[%s1924_s8 + $0x268] sm:$0xff]  ;;  %v833_v58 = vpack.c.bf16 %v2159_v24, %v2154_v22  ;;  %v772_v59 = vpack.c.bf16 %v578_v41, %v2167_v35  ;;  %v703_v60 = vld [vmem:[%s2633_s1 + $0x6c0] sm:$0xff]  ;;  %v836_v63 = vpack.c.bf16 %v706_v43, %v704_v42  ;;  %v2263_v13 = vld [vmem:[%s2633_s1 + $0x6f0] sm:$0xff] }
  0x55   : > { %915 = vmatprep.mubr.bf16.mxu1 %v464_v7  ;;  %v472_v52 = vpack.c.bf16 %v424_v44, %v416_v36  ;;  %v2218_v62 = vld [vmem:[%s2633_s1 + $0x2e8] sm:$0xff]  ;;  %v2233_v4 = vmul.f32 %v1956_v28, %v323_v50  ;;  %v2239_v6 = vld [vmem:[%s2633_s1 + $0x2e0] sm:$0xff]  ;;  %v2244_v7 = vld [vmem:[%s2633_s1 + $0x2f0] sm:$0xff]  ;;  %v2247_v8 = vmul.f32 %v1953_v27, %v311_v55  ;;  %v835_v18 = vpack.c.bf16 %v705_v61, %v703_v60 }
  0x56   : > { %953 = vmatpush1.bf16.msra.mxu1 %v765_v54  ;;  %v423_v54 = vmul.f32 %v1959_v29, %v302_v38  ;;  %v708_v1 = vld [vmem:[%s2633_s1 + $0x6e8] sm:$0xff]  ;;  %v2258_v12 = vld [vmem:[%s2633_s1 + $0x6e0] sm:$0xff]  ;;  %v774_v19 = vpack.c.bf16 %v582_v0, %v2218_v62  ;;  %v586_v26 = vld [vmem:[%s2633_s1 + $0x318] sm:$0xff] }
  0x57   : > { %1119 = vmatpush1.bf16.msra.mxu0 %v829_v3  ;;  %954 = vmatprep.subr.bf16.mxu1 %v768_v10  ;;  %v2230_v3 = vmul.f32 %v1956_v28, %v315_v49  ;;  %v2250_v28 = vmul.f32 %v1953_v27, %v319_v56  ;;  %v341_v10 = vsub.s32 3, %v1919_v9  ;;  %v475_v27 = vpack.c.bf16 %v2191_v48, %v2188_v47  ;;  %v314_v14 = vld [vmem:[%s1924_s8 + $0x220] sm:$0xff]  ;;  %v2274_v21 = vld [vmem:[%s2633_s1 + $0x308] sm:$0xff]  ;;  %v253_v38 = vld [vmem:[%s1924_s8 + $0x38] sm:$0xff] }
  0x58   : > { %1120 = vmatprep.subr.bf16.mxu0 %v832_v11  ;;  %v771_v11 = vpack.c.bf16 %v2198_v51, %v2185_v45  ;;  %v322_v15 = vld [vmem:[%s1924_s8 + $0x260] sm:$0xff]  ;;  %v471_v16 = vpack.c.bf16 %v423_v54, %v415_v53  ;;  %v838_v20 = vpack.c.bf16 %v710_v2, %v708_v1  ;;  %v712_v30 = vld [vmem:[%s2633_s1 + $0x708] sm:$0xff]  ;;  %v2300_v36 = vmul.f32 %v1964_v32, %v314_v14  ;;  %v248_v41 = vld [vmem:[%s1924_s8 + $0x10] sm:$0xff] }
  0x59   : > { %916 = vmatmul.mubr.bf16.gmra.mrb[8].mxu1 %v463_v31  ;;  %v310_v22 = vld [vmem:[%s1924_s8 + $0x200] sm:$0xff]  ;;  %v714_v31 = vld [vmem:[%s2633_s1 + $0x718] sm:$0xff]  ;;  %v2303_v37 = vmul.f32 %v1964_v32, %v322_v15  ;;  %v256_v42 = vld [vmem:[%s1924_s8 + $0x50] sm:$0xff]  ;;  %v2319_v32 = vrot.slane %v1947_v23, %v337_v17  ;;  %v837_v48 = vpack.c.bf16 %v2263_v13, %v2258_v12  ;;  %v776_v49 = vpack.c.bf16 %v586_v26, %v2274_v21 }
  0x5a   : > { %1082 = vmatmul.mubr.bf16.gmra.mrb[8].mxu0 %v467_v25  ;;  %955 = vmatpush1.bf16.msra.mxu1 %v767_v33  ;;  %v318_v24 = vld [vmem:[%s1924_s8 + $0x240] sm:$0xff]  ;;  %v773_v25 = vpack.c.bf16 %v2244_v7, %v2239_v6  ;;  %v484_v33 = vpack.c.bf16 %v2233_v4, %v2230_v3  ;;  %v261_v43 = vld [vmem:[%s1924_s8 + $0x78] sm:$0xff]  ;;  %v431_v44 = vmul.f32 %v1959_v29, %v310_v22  ;;  %v585_v51 = vld [vmem:[%s2633_s1 + $0x310] sm:$0xff]  ;;  %v353_v26 = vsub.s32 6, %v1919_v9 }
  0x5b   : > { %1121 = vmatpush1.bf16.msra.mxu0 %v831_v34  ;;  %956 = vmatprep.subr.bf16.mxu1 %v770_v39  ;;  %v2292_v34 = vrot.slane %v1947_v23, %v357_v5  ;;  %v2297_v35 = vld [vmem:[%s2633_s1 + $0x300] sm:$0xff]  ;;  %v480_v39 = vpack.c.bf16 %v2250_v28, %v2247_v8  ;;  %v439_v45 = vmul.f32 %v1959_v29, %v318_v24  ;;  %v257_v47 = vld [vmem:[%s1924_s8 + $0x58] sm:$0xff]  ;;  %v588_v53 = vld [vmem:[%s2633_s1 + $0x328] sm:$0xff] }
  0x5c   : > { %1122 = vmatprep.subr.bf16.mxu0 %v834_v40  ;;  %1091 = vmatprep.mubr.bf16.mxu0 %v476_v46  ;;  %v2309_v40 = vrot.slane %v1947_v23, %v341_v10  ;;  %v249_v46 = vld [vmem:[%s1924_s8 + $0x18] sm:$0xff]  ;;  %v840_v50 = vpack.c.bf16 %v714_v31, %v712_v30  ;;  %v711_v29 = vld [vmem:[%s2633_s1 + $0x700] sm:$0xff]  ;;  %v2340_v55 = vmul.f32 %v2319_v32, %v248_v41  ;;  %v716_v60 = vld [vmem:[%s2633_s1 + $0x728] sm:$0xff] }
  0x5d   : > { %925 = vmatprep.mubr.bf16.mxu1 %v472_v52  ;;  %v713_v52 = vld [vmem:[%s2633_s1 + $0x710] sm:$0xff]  ;;  %v2337_v54 = vmul.f32 %v2292_v34, %v253_v38  ;;  %v2343_v56 = vmul.f32 %v2319_v32, %v256_v42  ;;  %v718_v61 = vld [vmem:[%s2633_s1 + $0x738] sm:$0xff]  ;;  %v382_v62 = vmul.f32 %v2292_v34, %v261_v43  ;;  %v775_v1 = vpack.c.bf16 %v585_v51, %v2297_v35  ;;  %v587_v2 = vld [vmem:[%s2633_s1 + $0x320] sm:$0xff] }
  0x5e   : > { %957 = vmatpush1.bf16.msra.mxu1 %v769_v57  ;;  %v264_v57 = vld [vmem:[%s1924_s8 + $0x90] sm:$0xff]  ;;  %v378_v0 = vmul.f32 %v2309_v40, %v257_v47  ;;  %v483_v3 = vpack.c.bf16 %v2303_v37, %v2300_v36  ;;  %v479_v4 = vpack.c.bf16 %v439_v45, %v431_v44  ;;  %v839_v6 = vpack.c.bf16 %v713_v52, %v711_v29  ;;  %v715_v8 = vld [vmem:[%s2633_s1 + $0x720] sm:$0xff]  ;;  %v592_v14 = vld [vmem:[%s2633_s1 + $0x348] sm:$0xff] }
  0x5f   : > { %1123 = vmatpush1.bf16.msra.mxu0 %v833_v58  ;;  %958 = vmatprep.subr.bf16.mxu1 %v772_v59  ;;  %v272_v58 = vld [vmem:[%s1924_s8 + $0xd0] sm:$0xff]  ;;  %v590_v59 = vld [vmem:[%s2633_s1 + $0x338] sm:$0xff]  ;;  %v449_v5 = vpack.c.bf16 %v2343_v56, %v2340_v55  ;;  %v2374_v28 = vmul.f32 %v2319_v32, %v264_v57  ;;  %v842_v13 = vpack.c.bf16 %v718_v61, %v716_v60  ;;  %v720_v17 = vld [vmem:[%s2633_s1 + $0x748] sm:$0xff] }
  0x60   : > { %1124 = vmatprep.subr.bf16.mxu0 %v836_v63  ;;  %v370_v63 = vmul.f32 %v2309_v40, %v249_v46  ;;  %v589_v7 = vld [vmem:[%s2633_s1 + $0x330] sm:$0xff]  ;;  %v2377_v10 = vmul.f32 %v2319_v32, %v272_v58  ;;  %v778_v12 = vpack.c.bf16 %v590_v59, %v588_v53  ;;  %v591_v22 = vld [vmem:[%s2633_s1 + $0x340] sm:$0xff]  ;;  %v596_v41 = vld [vmem:[%s2633_s1 + $0x368] sm:$0xff]  ;;  %v2444_v51 = vrot.slane %v1947_v23, %v353_v26 }
  0x61   : > { %926 = vmatmul.mubr.bf16.gmra.mrb[12].mxu1 %v471_v16  ;;  %v288_v15 = vld [vmem:[%s1924_s8 + $0x150] sm:$0xff]  ;;  %v594_v16 = vld [vmem:[%s2633_s1 + $0x358] sm:$0xff]  ;;  %v777_v31 = vpack.c.bf16 %v589_v7, %v587_v2  ;;  %v724_v44 = vld [vmem:[%s2633_s1 + $0x768] sm:$0xff] }
  0x62   : > { %1092 = vmatmul.mubr.bf16.gmra.mrb[12].mxu0 %v475_v27  ;;  %959 = vmatpush1.bf16.msra.mxu1 %v771_v11  ;;  %v280_v11 = vld [vmem:[%s1924_s8 + $0x110] sm:$0xff]  ;;  %v457_v21 = vpack.c.bf16 %v2377_v10, %v2374_v28  ;;  %v2416_v36 = vmul.f32 %v2319_v32, %v288_v15  ;;  %v780_v9 = vpack.c.bf16 %v594_v16, %v592_v14  ;;  %v598_v42 = vld [vmem:[%s2633_s1 + $0x378] sm:$0xff]  ;;  %v723_v57 = vld [vmem:[%s2633_s1 + $0x760] sm:$0xff] }
  0x63   : > { %1125 = vmatpush1.bf16.msra.mxu0 %v835_v18  ;;  %960 = vmatprep.subr.bf16.mxu1 %v774_v19  ;;  %v717_v27 = vld [vmem:[%s2633_s1 + $0x730] sm:$0xff]  ;;  %v722_v18 = vld [vmem:[%s2633_s1 + $0x758] sm:$0xff]  ;;  %v454_v19 = vpack.c.bf16 %v382_v62, %v2337_v54  ;;  %v2410_v30 = vmul.f32 %v2319_v32, %v280_v11  ;;  %v782_v54 = vpack.c.bf16 %v598_v42, %v596_v41  ;;  %v600_v2 = vld [vmem:[%s2633_s1 + $0x388] sm:$0xff] }
  0x64   : > { %1126 = vmatprep.subr.bf16.mxu0 %v838_v20  ;;  %1101 = vmatprep.mubr.bf16.mxu0 %v484_v33  ;;  %v450_v20 = vpack.c.bf16 %v378_v0, %v370_v63  ;;  %v593_v24 = vld [vmem:[%s2633_s1 + $0x350] sm:$0xff]  ;;  %v841_v33 = vpack.c.bf16 %v717_v27, %v715_v8  ;;  %v726_v45 = vld [vmem:[%s2633_s1 + $0x778] sm:$0xff]  ;;  %v599_v27 = vld [vmem:[%s2633_s1 + $0x380] sm:$0xff] }
  0x65   : > { %935 = vmatprep.mubr.bf16.mxu1 %v480_v39  ;;  %v721_v35 = vld [vmem:[%s2633_s1 + $0x750] sm:$0xff]  ;;  %v844_v39 = vpack.c.bf16 %v722_v18, %v720_v17  ;;  %v465_v46 = vpack.c.bf16 %v2416_v36, %v2410_v30  ;;  %v846_v60 = vpack.c.bf16 %v726_v45, %v724_v44  ;;  %v269_v62 = vld [vmem:[%s1924_s8 + $0xb8] sm:$0xff]  ;;  %v604_v15 = vld [vmem:[%s2633_s1 + $0x3a8] sm:$0xff] }
  0x66   : > { %961 = vmatpush1.bf16.msra.mxu1 %v773_v25  ;;  %v719_v25 = vld [vmem:[%s2633_s1 + $0x740] sm:$0xff]  ;;  %v296_v37 = vld [vmem:[%s1924_s8 + $0x190] sm:$0xff]  ;;  %v277_v63 = vld [vmem:[%s1924_s8 + $0xf8] sm:$0xff]  ;;  %v390_v11 = vmul.f32 %v2292_v34, %v269_v62 }
  0x67   : > { %1127 = vmatpush1.bf16.msra.mxu0 %v837_v48  ;;  %962 = vmatprep.subr.bf16.mxu1 %v776_v49  ;;  %v304_v38 = vld [vmem:[%s1924_s8 + $0x1d0] sm:$0xff]  ;;  %v779_v48 = vpack.c.bf16 %v593_v24, %v591_v22  ;;  %v595_v49 = vld [vmem:[%s2633_s1 + $0x360] sm:$0xff]  ;;  %v2447_v29 = vmul.f32 %v2319_v32, %v296_v37  ;;  %v843_v53 = vpack.c.bf16 %v721_v35, %v719_v25  ;;  %v606_v16 = vld [vmem:[%s2633_s1 + $0x3b8] sm:$0xff] }
  0x68   : > { %1128 = vmatprep.subr.bf16.mxu0 %v840_v50  ;;  %v312_v43 = vld [vmem:[%s1924_s8 + $0x210] sm:$0xff]  ;;  %v2450_v52 = vmul.f32 %v2319_v32, %v304_v38  ;;  %v786_v25 = vpack.c.bf16 %v606_v16, %v604_v15  ;;  %v608_v35 = vld [vmem:[%s2633_s1 + $0x3c8] sm:$0xff]  ;;  %v610_v37 = vld [vmem:[%s2633_s1 + $0x3d8] sm:$0xff] }
  0x69   : > { %936 = vmatmul.mubr.bf16.gmra.mrb[16].mxu1 %v479_v4  ;;  %v320_v47 = vld [vmem:[%s1924_s8 + $0x250] sm:$0xff]  ;;  %v2458_v23 = vmul.f32 %v2319_v32, %v312_v43  ;;  %v788_v43 = vpack.c.bf16 %v610_v37, %v608_v35  ;;  %v607_v44 = vld [vmem:[%s2633_s1 + $0x3c0] sm:$0xff]  ;;  %v273_v62 = vld [vmem:[%s1924_s8 + $0xd8] sm:$0xff] }
  0x6a   : > { %1102 = vmatmul.mubr.bf16.gmra.mrb[16].mxu0 %v483_v3  ;;  %963 = vmatpush1.bf16.msra.mxu1 %v775_v1  ;;  %v597_v50 = vld [vmem:[%s2633_s1 + $0x370] sm:$0xff]  ;;  %v473_v0 = vpack.c.bf16 %v2450_v52, %v2447_v29  ;;  %v2468_v1 = vmul.f32 %v2319_v32, %v320_v47  ;;  %v602_v3 = vld [vmem:[%s2633_s1 + $0x398] sm:$0xff]  ;;  %v612_v47 = vld [vmem:[%s2633_s1 + $0x3e8] sm:$0xff] }
  0x6b   : > { %1129 = vmatpush1.bf16.msra.mxu0 %v839_v6  ;;  %964 = vmatprep.subr.bf16.mxu1 %v778_v12  ;;  %v252_v58 = vld [vmem:[%s1924_s8 + $0x30] sm:$0xff]  ;;  %v781_v4 = vpack.c.bf16 %v597_v50, %v595_v49  ;;  %v398_v12 = vmul.f32 %v2292_v34, %v277_v63  ;;  %v611_v50 = vld [vmem:[%s2633_s1 + $0x3e0] sm:$0xff]  ;;  %v301_v63 = vld [vmem:[%s1924_s8 + $0x1b8] sm:$0xff] }
  0x6c   : > { %1130 = vmatprep.subr.bf16.mxu0 %v842_v13  ;;  %1345 = vmatprep.mubr.msk.bf16.mxu0 %vm847_vm0, %v454_v19  ;;  %v260_v59 = vld [vmem:[%s1924_s8 + $0x70] sm:$0xff]  ;;  %v373_v6 = vmul.f32 %v2444_v51, %v252_v58  ;;  %v481_v8 = vpack.c.bf16 %v2468_v1, %v2458_v23  ;;  %v784_v13 = vpack.c.bf16 %v602_v3, %v600_v2  ;;  %v603_v19 = vld [vmem:[%s2633_s1 + $0x3a0] sm:$0xff]  ;;  %v309_v2 = vld [vmem:[%s1924_s8 + $0x1f8] sm:$0xff] }
  0x6d   : > { %978 = vmatprep.mubr.bf16.mxu1 %v450_v20  ;;  %v725_v61 = vld [vmem:[%s2633_s1 + $0x770] sm:$0xff]  ;;  %v381_v7 = vmul.f32 %v2444_v51, %v260_v59  ;;  %v462_v20 = vpack.c.bf16 %v398_v12, %v390_v11  ;;  %v422_v11 = vmul.f32 %v2292_v34, %v301_v63  ;;  %v430_v12 = vmul.f32 %v2292_v34, %v309_v2 }
  0x6e   : > { %965 = vmatpush1.bf16.msra.mxu1 %v777_v31  ;;  %v845_v32 = vpack.c.bf16 %v725_v61, %v723_v57  ;;  %v601_v14 = vld [vmem:[%s2633_s1 + $0x390] sm:$0xff]  ;;  %v285_v31 = vld [vmem:[%s1924_s8 + $0x138] sm:$0xff] }
  0x6f   : > { %1131 = vmatpush1.bf16.msra.mxu0 %v841_v33  ;;  %966 = vmatprep.subr.bf16.mxu1 %v780_v9  ;;  %v453_v17 = vpack.c.bf16 %v381_v7, %v373_v6  ;;  %v783_v18 = vpack.c.bf16 %v601_v14, %v599_v27  ;;  %v268_v22 = vld [vmem:[%s1924_s8 + $0xb0] sm:$0xff]  ;;  %v293_v33 = vld [vmem:[%s1924_s8 + $0x178] sm:$0xff]  ;;  %v406_v41 = vmul.f32 %v2292_v34, %v285_v31 }
  0x70   : > { %1132 = vmatprep.subr.bf16.mxu0 %v844_v39  ;;  %v276_v24 = vld [vmem:[%s1924_s8 + $0xf0] sm:$0xff]  ;;  %v389_v38 = vmul.f32 %v2444_v51, %v268_v22  ;;  %v414_v42 = vmul.f32 %v2292_v34, %v293_v33  ;;  %v478_v14 = vpack.c.bf16 %v430_v12, %v422_v11 }
  0x71   : > { %v605_v26 = vld [vmem:[%s2633_s1 + $0x3b0] sm:$0xff]  ;;  %v397_v9 = vmul.f32 %v2444_v51, %v276_v24 }
  0x72   : > { %967 = vmatpush1.bf16.msra.mxu1 %v779_v48  ;;  %v785_v39 = vpack.c.bf16 %v605_v26, %v603_v19  ;;  %v609_v45 = vld [vmem:[%s2633_s1 + $0x3d0] sm:$0xff]  ;;  %v614_v48 = vld [vmem:[%s2633_s1 + $0x3f8] sm:$0xff]  ;;  %v470_v57 = vpack.c.bf16 %v414_v42, %v406_v41 }
  0x73   : > { %1133 = vmatpush1.bf16.msra.mxu0 %v843_v53  ;;  %968 = vmatprep.subr.bf16.mxu1 %v782_v54  ;;  %v461_v49 = vpack.c.bf16 %v397_v9, %v389_v38  ;;  %v613_v53 = vld [vmem:[%s2633_s1 + $0x3f0] sm:$0xff]  ;;  %v787_v54 = vpack.c.bf16 %v609_v45, %v607_v44  ;;  %v790_v61 = vpack.c.bf16 %v614_v48, %v612_v47  ;;  %v317_v19 = vld [vmem:[%s1924_s8 + $0x238] sm:$0xff] }
  0x74   : > { %1134 = vmatprep.subr.bf16.mxu0 %v846_v60  ;;  %v284_v58 = vld [vmem:[%s1924_s8 + $0x130] sm:$0xff]  ;;  %v265_v60 = vld [vmem:[%s1924_s8 + $0x98] sm:$0xff]  ;;  %v789_v3 = vpack.c.bf16 %v613_v53, %v611_v50  ;;  %v438_v31 = vmul.f32 %v2292_v34, %v317_v19 }
  0x75   : > { %v292_v59 = vld [vmem:[%s1924_s8 + $0x170] sm:$0xff]  ;;  %v386_v7 = vmul.f32 %v2309_v40, %v265_v60  ;;  %v297_v38 = vld [vmem:[%s1924_s8 + $0x198] sm:$0xff] }
  0x76   : > { %969 = vmatpush1.bf16.msra.mxu1 %v781_v4  ;;  %v405_v4 = vmul.f32 %v2444_v51, %v284_v58  ;;  %v413_v6 = vmul.f32 %v2444_v51, %v292_v59  ;;  %v300_v15 = vld [vmem:[%s1924_s8 + $0x1b0] sm:$0xff]  ;;  %v305_v9 = vld [vmem:[%s1924_s8 + $0x1d8] sm:$0xff] }
  0x77   : > { %1135 = vmatpush1.bf16.msra.mxu0 %v845_v32  ;;  %970 = vmatprep.subr.bf16.mxu1 %v784_v13  ;;  %v394_v32 = vmul.f32 %v2309_v40, %v273_v62  ;;  %v308_v16 = vld [vmem:[%s1924_s8 + $0x1f0] sm:$0xff]  ;;  %v421_v22 = vmul.f32 %v2444_v51, %v300_v15  ;;  %v426_v42 = vmul.f32 %v2309_v40, %v305_v9  ;;  %v313_v45 = vld [vmem:[%s1924_s8 + $0x218] sm:$0xff] }
  0x78   : > { %v469_v13 = vpack.c.bf16 %v413_v6, %v405_v4  ;;  %v429_v24 = vmul.f32 %v2444_v51, %v308_v16  ;;  %v316_v35 = vld [vmem:[%s1924_s8 + $0x230] sm:$0xff]  ;;  %v321_v47 = vld [vmem:[%s1924_s8 + $0x258] sm:$0xff]  ;;  %v434_v28 = vmul.f32 %v2309_v40, %v313_v45 }
  0x79   : > { %v458_v27 = vpack.c.bf16 %v394_v32, %v386_v7  ;;  %v324_v37 = vld [vmem:[%s1924_s8 + $0x270] sm:$0xff]  ;;  %v442_v10 = vmul.f32 %v2309_v40, %v321_v47 }
  0x7a   : > { %1145 = vmatmul.mubr.bf16.vlgmr.msra.gmra.mrb[0].mxu0 %v453_v17  ;;  %971 = vmatpush1.bf16.msra.mxu1 %v783_v18  ;;  %v281_v17 = vld [vmem:[%s1924_s8 + $0x118] sm:$0xff]  ;;  %v477_v55 = vpack.c.bf16 %v429_v24, %v421_v22  ;;  %v445_v41 = vmul.f32 %v2444_v51, %v324_v37 }
  0x7b   : > { %1346 = vmatprep.mubr.msk.bf16.mxu0 %vm847_vm0, %v462_v20  ;;  %972 = vmatprep.subr.bf16.mxu1 %v786_v25  ;;  %v289_v18 = vld [vmem:[%s1924_s8 + $0x158] sm:$0xff]  ;;  %v402_v25 = vmul.f32 %v2309_v40, %v281_v17 }
  0x7c   : > { %v325_v20 = vld [vmem:[%s1924_s8 + $0x278] sm:$0xff]  ;;  %v410_v26 = vmul.f32 %v2309_v40, %v289_v18  ;;  %s1353_s8 = sshll.u32 %s2642_s27, 4 }
  0x7d   : > { %v446_v33 = vmul.f32 %v2292_v34, %v325_v20  ;;  %v418_v34 = vmul.f32 %v2309_v40, %v297_v38  ;;  %s2591_s6 = scalar_lea.vmem %s2635_s3, %s1353_s8 }
  0x7e   : > { %973 = vmatpush1.bf16.msra.mxu1 %v785_v39  ;;  %v466_v56 = vpack.c.bf16 %v410_v26, %v402_v25  ;;  %v437_v39 = vmul.f32 %v2444_v51, %v316_v35 }
  0x7f   : > { %974 = vmatprep.subr.bf16.mxu1 %v788_v43  ;;  %v474_v44 = vpack.c.bf16 %v426_v42, %v418_v34 }
  0x80   : > { %v485_v43 = vpack.c.bf16 %v445_v41, %v437_v39 }
  0x82   : > { %1155 = vmatmul.mubr.bf16.gmra.mrb[4].mxu0 %v461_v49  ;;  %975 = vmatpush1.bf16.msra.mxu1 %v787_v54 }
  0x83   : > { %1347 = vmatprep.mubr.msk.bf16.mxu0 %vm847_vm0, %v470_v57  ;;  %976 = vmatprep.subr.bf16.mxu1 %v790_v61 }
  0x86   : > { %977 = vmatpush1.bf16.msra.mxu1 %v789_v3 }
  0x89   : > { %979 = vmatmul.mubr.bf16.vlgmr.msra.gmra.mrb[0].mxu1 %v449_v5  ;;  %v486_v5 = vpack.c.bf16 %v446_v33, %v438_v31 }
  0x8a   : > { %1165 = vmatmul.mubr.bf16.gmra.mrb[8].mxu0 %v469_v13  ;;  %988 = vmatprep.mubr.bf16.mxu1 %v458_v27 }
  0x8b   : > { %1348 = vmatprep.mubr.msk.bf16.mxu0 %vm847_vm0, %v478_v14 }
  0x91   : > { %989 = vmatmul.mubr.bf16.gmra.mrb[4].mxu1 %v457_v21  ;;  %v482_v21 = vpack.c.bf16 %v442_v10, %v434_v28 }
  0x92   : > { %1175 = vmatmul.mubr.bf16.gmra.mrb[12].mxu0 %v477_v55  ;;  %998 = vmatprep.mubr.bf16.mxu1 %v466_v56 }
  0x93   : > { %1349 = vmatprep.mubr.msk.bf16.mxu0 %vm847_vm0, %v486_v5 }
  0x99   : > { %999 = vmatmul.mubr.bf16.gmra.mrb[8].mxu1 %v465_v46 }
  0x9a   : > { %1185 = vmatmul.mubr.bf16.gmra.mrb[16].mxu0 %v485_v43  ;;  %1008 = vmatprep.mubr.bf16.mxu1 %v474_v44 }
  0xa1   : > { %1009 = vmatmul.mubr.bf16.gmra.mrb[12].mxu1 %v473_v0 }
  0xa2   : > { %1018 = vmatprep.mubr.bf16.mxu1 %v482_v21 }
  0xa9   : > { %1019 = vmatmul.mubr.bf16.gmra.mrb[16].mxu1 %v481_v8 }
 0x14d   : > { %v1146_v51 = vpop.f32.mrb[0].mxu0 }
 0x14e   : > { %v1148_v30 = vpop.f32.mrb[1].mxu0 }
 0x14f   : > { %v1150_v36 = vpop.f32.mrb[2].mxu0 }
 0x150   : > { %v1152_v46 = vpop.f32.mrb[3].mxu0 }
 0x155   : > { %v1156_v48 = vpop.f32.mrb[4].mxu0 }
 0x156   : > { %v1158_v49 = vpop.f32.mrb[5].mxu0 }
 0x157   : > { %v1160_v50 = vpop.f32.mrb[6].mxu0 }
 0x158   : > { %v1162_v53 = vpop.f32.mrb[7].mxu0 }
 0x15c   : > { %v980_v40 = vpop.f32.mrb[0].mxu1 }
 0x15d   : > { %v1166_v29 = vpop.f32.mrb[8].mxu0  ;;  %v1354_v52 = vadd.f32 %v1146_v51, %v980_v40  ;;  %v982_v23 = vpop.f32.mrb[1].mxu1 }
 0x15e   : > { %v1168_v0 = vpop.f32.mrb[9].mxu0  ;;  %v1355_v1 = vadd.f32 %v1148_v30, %v982_v23  ;;  %v984_v8 = vpop.f32.mrb[2].mxu1 }
 0x15f   : > { %v1170_v54 = vpop.f32.mrb[10].mxu0  ;;  %1195 = vst [vmem:[%s2591_s6] sm:$0xff] %v1354_v52  ;;  %v1356_v57 = vadd.f32 %v1150_v36, %v984_v8  ;;  %v986_v58 = vpop.f32.mrb[3].mxu1 }
 0x160   : > { %v1172_v59 = vpop.f32.mrb[11].mxu0  ;;  %1197 = vst.msk [vmem:[%s2591_s6 + $0x8] sm:$0xff] %vm1196_vm1, %v1355_v1  ;;  %v1357_v60 = vadd.f32 %v1152_v46, %v986_v58 }
 0x161   : > { %1198 = vst [vmem:[%s2591_s6 + $0x10] sm:$0xff] %v1356_v57 }
 0x162   : > { %1199 = vst.msk [vmem:[%s2591_s6 + $0x18] sm:$0xff] %vm1196_vm1, %v1357_v60 }
 0x164   : > { %v990_v61 = vpop.f32.mrb[4].mxu1 }
 0x165   : > { %v1176_v62 = vpop.f32.mrb[12].mxu0  ;;  %v1358_v63 = vadd.f32 %v1156_v48, %v990_v61  ;;  %v992_v2 = vpop.f32.mrb[5].mxu1 }
 0x166   : > { %v1178_v3 = vpop.f32.mrb[13].mxu0  ;;  %v1359_v4 = vadd.f32 %v1158_v49, %v992_v2  ;;  %v994_v6 = vpop.f32.mrb[6].mxu1 }
 0x167   : > { %v1180_v7 = vpop.f32.mrb[14].mxu0  ;;  %1200 = vst [vmem:[%s2591_s6 + $0x20] sm:$0xff] %v1358_v63  ;;  %v1360_v32 = vadd.f32 %v1160_v50, %v994_v6  ;;  %v996_v11 = vpop.f32.mrb[7].mxu1 }
 0x168   : > { %v1182_v12 = vpop.f32.mrb[15].mxu0  ;;  %1201 = vst.msk [vmem:[%s2591_s6 + $0x28] sm:$0xff] %vm1196_vm1, %v1359_v4  ;;  %v1361_v13 = vadd.f32 %v1162_v53, %v996_v11 }
 0x169   : > { %1202 = vst [vmem:[%s2591_s6 + $0x30] sm:$0xff] %v1360_v32 }
 0x16a   : > { %1203 = vst.msk [vmem:[%s2591_s6 + $0x38] sm:$0xff] %vm1196_vm1, %v1361_v13 }
 0x16c   : > { %v1000_v27 = vpop.f32.mrb[8].mxu1 }
 0x16d   : > { %v1186_v14 = vpop.f32.mrb[16].mxu0  ;;  %v1362_v15 = vadd.f32 %v1166_v29, %v1000_v27  ;;  %v1002_v16 = vpop.f32.mrb[9].mxu1 }
 0x16e   : > { %v1188_v17 = vpop.f32.mrb[17].mxu0  ;;  %v1363_v18 = vadd.f32 %v1168_v0, %v1002_v16  ;;  %v1004_v19 = vpop.f32.mrb[10].mxu1 }
 0x16f   : > { %v1190_v20 = vpop.f32.mrb[18].mxu0  ;;  %1204 = vst [vmem:[%s2591_s6 + $0x40] sm:$0xff] %v1362_v15  ;;  %v1364_v22 = vadd.f32 %v1170_v54, %v1004_v19  ;;  %v1006_v24 = vpop.f32.mrb[11].mxu1 }
 0x170   : > { %v1192_v25 = vpop.f32.mrb[19].mxu0  ;;  %1205 = vst.msk [vmem:[%s2591_s6 + $0x48] sm:$0xff] %vm1196_vm1, %v1363_v18  ;;  %v1365_v26 = vadd.f32 %v1172_v59, %v1006_v24 }
 0x171   : > { %1206 = vst [vmem:[%s2591_s6 + $0x50] sm:$0xff] %v1364_v22 }
 0x172   : > { %1207 = vst.msk [vmem:[%s2591_s6 + $0x58] sm:$0xff] %vm1196_vm1, %v1365_v26 }
 0x174   : > { %v1010_v31 = vpop.f32.mrb[12].mxu1 }
 0x175   : > { %v1366_v33 = vadd.f32 %v1176_v62, %v1010_v31  ;;  %v1012_v55 = vpop.f32.mrb[13].mxu1 }
 0x176   : > { %v1367_v56 = vadd.f32 %v1178_v3, %v1012_v55  ;;  %v1014_v5 = vpop.f32.mrb[14].mxu1 }
 0x177   : > { %1208 = vst [vmem:[%s2591_s6 + $0x60] sm:$0xff] %v1366_v33  ;;  %v1368_v35 = vadd.f32 %v1180_v7, %v1014_v5  ;;  %v1016_v37 = vpop.f32.mrb[15].mxu1 }
 0x178   : > { %1209 = vst.msk [vmem:[%s2591_s6 + $0x68] sm:$0xff] %vm1196_vm1, %v1367_v56  ;;  %v1369_v38 = vadd.f32 %v1182_v12, %v1016_v37 }
 0x179   : > { %1210 = vst [vmem:[%s2591_s6 + $0x70] sm:$0xff] %v1368_v35 }
 0x17a   : > { %1211 = vst.msk [vmem:[%s2591_s6 + $0x78] sm:$0xff] %vm1196_vm1, %v1369_v38 }
 0x17c   : > { %v1020_v9 = vpop.f32.mrb[16].mxu1 }
 0x17d   : > { %v1370_v39 = vadd.f32 %v1186_v14, %v1020_v9  ;;  %v1022_v41 = vpop.f32.mrb[17].mxu1 }
 0x17e   : > { %v1371_v34 = vadd.f32 %v1188_v17, %v1022_v41  ;;  %v1024_v42 = vpop.f32.mrb[18].mxu1 }
 0x17f   : > { %1212 = vst [vmem:[%s2591_s6 + $0x80] sm:$0xff] %v1370_v39  ;;  %v1372_v43 = vadd.f32 %v1190_v20, %v1024_v42  ;;  %v1026_v44 = vpop.f32.mrb[19].mxu1 }
 0x180   : > { %1213 = vst.msk [vmem:[%s2591_s6 + $0x88] sm:$0xff] %vm1196_vm1, %v1371_v34  ;;  %v1373_v45 = vadd.f32 %v1192_v25, %v1026_v44 }
 0x181   : > { %1214 = vst [vmem:[%s2591_s6 + $0x90] sm:$0xff] %v1372_v43 }
 0x182   : > { %1215 = vst.msk [vmem:[%s2591_s6 + $0x98] sm:$0xff] %vm1196_vm1, %v1373_v45 }
 0x183 PF: > { %s13_s14 = sadd.s32 1, %s1464_s14   ;;  %s2637_s12 = smov %s1460_s13 }
 0x184   : > { %p10_p5 = scmp.ge.s32.totalorder %s13_s14, 4   ;;  %s2638_s13 = smov %s2640_s15 }
 0x186   :  { %12 = sbr.rel (!%p10_p5) target bundleno = 2 (0x2), region = 68 }

</bundles_post_ra>
